<compile_context>
chip_gen: v5e
topology: v5e:2x2
jax: 0.10.0
libtpu: 0.0.40
codegen_flags: <defaults>
</compile_context>

<pallas_src>
import numpy as np
import jax
import jax.numpy as jnp
from jax.experimental import pallas as pl
from jax.experimental.pallas import tpu as pltpu

POOL_SIZES = (2, 3, 5, 6)


# ----------------------------- constant builders (host / wrapper side) -----------------------------

def _interp_matrix(out_size, in_size):
    """Bilinear align_corners=True interpolation matrix, shape (out, in). Rows sum to 1."""
    if in_size == 1:
        return np.ones((out_size, 1), np.float64)
    if out_size == 1:
        src = np.zeros((1,), np.float64)
    else:
        src = np.arange(out_size, dtype=np.float64) * (in_size - 1) / (out_size - 1)
    i0 = np.clip(np.floor(src).astype(np.int64), 0, in_size - 1)
    i1 = np.clip(i0 + 1, 0, in_size - 1)
    frac = src - i0
    M = np.zeros((out_size, in_size), np.float64)
    M[np.arange(out_size), i0] += 1.0 - frac
    M[np.arange(out_size), i1] += frac
    return M


def _row_select_stacked(k, hp, H, C):
    """Sr[di*C*hp + c*hp + p, c*H + p*k + di] = 1  -> all k row-window shifts in one matrix."""
    S = np.zeros((k * C * hp, C * H), np.float32)
    p = np.arange(hp)
    for di in range(k):
        for c in range(C):
            S[di * C * hp + c * hp + p, c * H + p * k + di] = 1.0
    return S


def _col_select_stacked(k, wp, W):
    """Sc[q*k + dj, dj*wp + q] = 1  -> all k column-window shifts in one matrix (shared over C)."""
    S = np.zeros((W, k * wp), np.float32)
    q = np.arange(wp)
    for dj in range(k):
        S[q * k + dj, dj * wp + q] = 1.0
    return S


# ---------------------------------------- fused kernel --------------------------------------------

def _make_fused_kernel(C, H, W, pool_sizes):
    n_br = len(pool_sizes)

    def kernel(x_ref, b_ref, *rest):
        # x_ref : (C*H, W) VMEM slab of one batch  |  b_ref: (1,) SMEM conv bias
        # rest  : [Sr, Sc, RW, CmT] * n_branches, then o_ref ((n_br+C)*H, W)
        o_ref = rest[-1]
        consts = rest[:-1]
        x2 = x_ref[...]                                   # (C*H, W) float32
        bias = b_ref[0]

        for b, k in enumerate(pool_sizes):
            sr_ref, sc_ref, rw_ref, cmt_ref = consts[4 * b: 4 * b + 4]
            hp, wp = H // k, W // k                        # MaxPool2d floor mode
            chp = C * hp

            # --- row max-pool: ONE gather matmul over all k shifts, then VPU maxima ---
            sel = jnp.dot(sr_ref[...], x2, preferred_element_type=jnp.float32)     # (k*C*hp, W)
            rows = sel[0:chp, :]
            for di in range(1, k):
                rows = jnp.maximum(rows, sel[di * chp:(di + 1) * chp, :])           # (C*hp, W)

            # --- column max-pool: ONE gather matmul over all k shifts, then VPU maxima ---
            csel = jnp.dot(rows, sc_ref[...], preferred_element_type=jnp.float32)   # (C*hp, k*wp)
            pooled = csel[:, 0:wp]
            for dj in range(1, k):
                pooled = jnp.maximum(pooled, csel[:, dj * wp:(dj + 1) * wp])         # (C*hp, wp)

            # --- fused 1x1 conv + bilinear upsample: (R @ Wsel) @ pooled @ Cm^T + bias ---
            # bias after the upsample is exact because interpolation rows sum to 1.
            up = jnp.dot(jnp.dot(rw_ref[...], pooled, preferred_element_type=jnp.float32),
                         cmt_ref[...], preferred_element_type=jnp.float32)           # (H, W)
            o_ref[b * H:(b + 1) * H, :] = (up + bias).astype(o_ref.dtype)

        # --- pass-through copy of x into its final concat slot (no XLA concat needed) ---
        o_ref[n_br * H:, :] = x2.astype(o_ref.dtype)

    return kernel


# ------------------------------------------- wrapper ----------------------------------------------

def spp_block(x, conv_w, conv_b):
    """SPPblock forward. x: (N, C, H, W); conv_w: (C,) [Conv2d(C,1,1) weight]; conv_b: (1,)."""
    N, C, H, W = x.shape
    n_br = len(POOL_SIZES)

    # Layout-trivial 2-D view of x per batch (H multiple of 8 keeps the (8,128) tiling identical).
    x2 = x.reshape(N, C * H, W)
    conv_w = conv_w.astype(jnp.float32)
    conv_b = conv_b.astype(jnp.float32)

    consts = []
    in_specs = [
        pl.BlockSpec((None, C * H, W), lambda n: (n, 0, 0)),          # x slab, per batch
        pl.BlockSpec(memory_space=pltpu.MemorySpace.SMEM),            # conv bias (1,)
    ]
    for k in POOL_SIZES:
        hp, wp = H // k, W // k
        Sr = jnp.asarray(_row_select_stacked(k, hp, H, C))            # (k*C*hp, C*H)
        Sc = jnp.asarray(_col_select_stacked(k, wp, W))               # (W, k*wp)
        R = jnp.asarray(_interp_matrix(H, hp).astype(np.float32))     # (H, hp)
        # RW[i, c*hp+p] = conv_w[c] * R[i, p]  (conv weights folded into the upsample matrix)
        RW = (conv_w[None, :, None] * R[:, None, :]).reshape(H, C * hp)
        CmT = jnp.asarray(_interp_matrix(W, wp).T.astype(np.float32))  # (wp, W)
        consts += [Sr, Sc, RW, CmT]
        in_specs += [
            pl.BlockSpec(Sr.shape, lambda n: (0, 0)),                 # constants: same block each step
            pl.BlockSpec(Sc.shape, lambda n: (0, 0)),                 #  -> Pallas keeps them resident
            pl.BlockSpec(RW.shape, lambda n: (0, 0)),
            pl.BlockSpec(CmT.shape, lambda n: (0, 0)),
        ]

    kernel = _make_fused_kernel(C, H, W, POOL_SIZES)
    out2 = pl.pallas_call(
        kernel,
        out_shape=jax.ShapeDtypeStruct((N, (n_br + C) * H, W), x.dtype),
        grid=(N,),
        in_specs=in_specs,
        out_specs=pl.BlockSpec((None, (n_br + C) * H, W), lambda n: (n, 0, 0)),
        compiler_params=pltpu.CompilerParams(dimension_semantics=("parallel",)),
    )(x2, conv_b, *consts)

    # Layout-trivial split of the concatenated channel axis back out.
    return out2.reshape(N, n_br + C, H, W)


# ------------------------------------------ reference ---------------------------------------------

def _ref_spp_block(x, w, b):
    """Pure numpy float64 reference of the PyTorch forward."""
    x64 = np.asarray(x, np.float64)
    N, C, H, W = x64.shape
    w64 = np.asarray(w, np.float64)
    outs = []
    for k in POOL_SIZES:
        hp, wp = H // k, W // k
        win = x64[:, :, :hp * k, :wp * k].reshape(N, C, hp, k, wp, k)
        pooled = win.max(axis=(3, 5))
        conv = np.einsum('c,ncpq->npq', w64, pooled) + float(b[0])
        R = _interp_matrix(H, hp)
        Cm = _interp_matrix(W, wp)
        up = np.einsum('ip,npq,jq->nij', R, conv, Cm)
        outs.append(up[:, None])
    outs.append(x64)
    return np.concatenate(outs, axis=1)


if __name__ == "__main__":
    key = jax.random.PRNGKey(0)
    kx, kw, kb = jax.random.split(key, 3)
    N, C, H, W = 2, 4, 16, 16
    x = jax.random.normal(kx, (N, C, H, W), dtype=jnp.float32)
    conv_w = 0.1 * jax.random.normal(kw, (C,), dtype=jnp.float32)   # Conv2d(C, 1, 1) weight
    conv_b = 0.1 * jax.random.normal(kb, (1,), dtype=jnp.float32)   # Conv2d bias

    out = jax.block_until_ready(spp_block(x, conv_w, conv_b))
    assert out.shape == (N, 4 + C, H, W), out.shape

    ref = _ref_spp_block(np.asarray(x), np.asarray(conv_w), np.asarray(conv_b))
    err = float(np.max(np.abs(np.asarray(out) - ref)))
    assert np.allclose(np.asarray(out), ref, atol=1e-2, rtol=1e-2), err

    print("KERNEL_OK")
</pallas_src>

<mosaic_0001>
module attributes {stable_mosaic.version = 11 : i64} {
  func.func @kernel(%arg0: i32, %arg1: memref<1x64x16xf32, #tpu.memory_space<vmem>>, %arg2: memref<1xf32, #tpu.memory_space<smem>>, %arg3: memref<64x64xf32, #tpu.memory_space<vmem>>, %arg4: memref<16x16xf32, #tpu.memory_space<vmem>>, %arg5: memref<16x32xf32, #tpu.memory_space<vmem>>, %arg6: memref<8x16xf32, #tpu.memory_space<vmem>>, %arg7: memref<60x64xf32, #tpu.memory_space<vmem>>, %arg8: memref<16x15xf32, #tpu.memory_space<vmem>>, %arg9: memref<16x20xf32, #tpu.memory_space<vmem>>, %arg10: memref<5x16xf32, #tpu.memory_space<vmem>>, %arg11: memref<60x64xf32, #tpu.memory_space<vmem>>, %arg12: memref<16x15xf32, #tpu.memory_space<vmem>>, %arg13: memref<16x12xf32, #tpu.memory_space<vmem>>, %arg14: memref<3x16xf32, #tpu.memory_space<vmem>>, %arg15: memref<48x64xf32, #tpu.memory_space<vmem>>, %arg16: memref<16x12xf32, #tpu.memory_space<vmem>>, %arg17: memref<16x8xf32, #tpu.memory_space<vmem>>, %arg18: memref<2x16xf32, #tpu.memory_space<vmem>>, %arg19: memref<1x128x16xf32, #tpu.memory_space<vmem>>) attributes {dimension_semantics = [#tpu.dimension_semantics<parallel>], iteration_bounds = array<i64: 2>, scalar_prefetch = 0 : i64, scratch_operands = 0 : i64, tpu.core_type = #tpu.core_type<tc>, window_params = [{transform_indices = @transform_0, window_bounds = array<i64: 1, 64, 16>}, {transform_indices = @transform_1, window_bounds = array<i64: 1>}, {pipeline_mode = #tpu.pipeline_mode<synchronous>, transform_indices = @transform_2, window_bounds = array<i64: 64, 64>}, {pipeline_mode = #tpu.pipeline_mode<synchronous>, transform_indices = @transform_3, window_bounds = array<i64: 16, 16>}, {pipeline_mode = #tpu.pipeline_mode<synchronous>, transform_indices = @transform_4, window_bounds = array<i64: 16, 32>}, {pipeline_mode = #tpu.pipeline_mode<synchronous>, transform_indices = @transform_5, window_bounds = array<i64: 8, 16>}, {pipeline_mode = #tpu.pipeline_mode<synchronous>, transform_indices = @transform_6, window_bounds = array<i64: 60, 64>}, {pipeline_mode = #tpu.pipeline_mode<synchronous>, transform_indices = @transform_7, window_bounds = array<i64: 16, 15>}, {pipeline_mode = #tpu.pipeline_mode<synchronous>, transform_indices = @transform_8, window_bounds = array<i64: 16, 20>}, {pipeline_mode = #tpu.pipeline_mode<synchronous>, transform_indices = @transform_9, window_bounds = array<i64: 5, 16>}, {pipeline_mode = #tpu.pipeline_mode<synchronous>, transform_indices = @transform_10, window_bounds = array<i64: 60, 64>}, {pipeline_mode = #tpu.pipeline_mode<synchronous>, transform_indices = @transform_11, window_bounds = array<i64: 16, 15>}, {pipeline_mode = #tpu.pipeline_mode<synchronous>, transform_indices = @transform_12, window_bounds = array<i64: 16, 12>}, {pipeline_mode = #tpu.pipeline_mode<synchronous>, transform_indices = @transform_13, window_bounds = array<i64: 3, 16>}, {pipeline_mode = #tpu.pipeline_mode<synchronous>, transform_indices = @transform_14, window_bounds = array<i64: 48, 64>}, {pipeline_mode = #tpu.pipeline_mode<synchronous>, transform_indices = @transform_15, window_bounds = array<i64: 16, 12>}, {pipeline_mode = #tpu.pipeline_mode<synchronous>, transform_indices = @transform_16, window_bounds = array<i64: 16, 8>}, {pipeline_mode = #tpu.pipeline_mode<synchronous>, transform_indices = @transform_17, window_bounds = array<i64: 2, 16>}, {transform_indices = @transform_18, window_bounds = array<i64: 1, 128, 16>}]} {
    %c0 = arith.constant 0 : index
    %c0_0 = arith.constant 0 : index
    %c0_1 = arith.constant 0 : index
    %0 = vector.load %arg1[%c0, %c0_0, %c0_1] : memref<1x64x16xf32, #tpu.memory_space<vmem>>, vector<1x64x16xf32>
    %1 = vector.shape_cast %0 : vector<1x64x16xf32> to vector<64x16xf32>
    %c0_2 = arith.constant 0 : index
    %2 = memref.load %arg2[%c0_2] : memref<1xf32, #tpu.memory_space<smem>>
    %c0_3 = arith.constant 0 : index
    %c0_4 = arith.constant 0 : index
    %3 = vector.load %arg3[%c0_3, %c0_4] : memref<64x64xf32, #tpu.memory_space<vmem>>, vector<64x64xf32>
    %cst = arith.constant dense<0.000000e+00> : vector<64x16xf32>
    %4 = tpu.matmul %3, %1, %cst {dimension_numbers = #tpu.dot_dimension_numbers<[1], [0], [0], [1], [0, 0, 1, 1], [], []>} : vector<64x64xf32>, vector<64x16xf32>, vector<64x16xf32> -> vector<64x16xf32>
    %5 = vector.extract_strided_slice %4 {offsets = [0, 0], sizes = [32, 16], strides = [1, 1]} : vector<64x16xf32> to vector<32x16xf32>
    %6 = vector.extract_strided_slice %4 {offsets = [32, 0], sizes = [32, 16], strides = [1, 1]} : vector<64x16xf32> to vector<32x16xf32>
    %7 = arith.maximumf %5, %6 : vector<32x16xf32>
    %c0_5 = arith.constant 0 : index
    %c0_6 = arith.constant 0 : index
    %8 = vector.load %arg4[%c0_5, %c0_6] : memref<16x16xf32, #tpu.memory_space<vmem>>, vector<16x16xf32>
    %cst_7 = arith.constant dense<0.000000e+00> : vector<32x16xf32>
    %9 = tpu.matmul %7, %8, %cst_7 {dimension_numbers = #tpu.dot_dimension_numbers<[1], [0], [0], [1], [0, 0, 1, 1], [], []>} : vector<32x16xf32>, vector<16x16xf32>, vector<32x16xf32> -> vector<32x16xf32>
    %10 = vector.extract_strided_slice %9 {offsets = [0, 0], sizes = [32, 8], strides = [1, 1]} : vector<32x16xf32> to vector<32x8xf32>
    %11 = vector.extract_strided_slice %9 {offsets = [0, 8], sizes = [32, 8], strides = [1, 1]} : vector<32x16xf32> to vector<32x8xf32>
    %12 = arith.maximumf %10, %11 : vector<32x8xf32>
    %c0_8 = arith.constant 0 : index
    %c0_9 = arith.constant 0 : index
    %13 = vector.load %arg5[%c0_8, %c0_9] : memref<16x32xf32, #tpu.memory_space<vmem>>, vector<16x32xf32>
    %cst_10 = arith.constant dense<0.000000e+00> : vector<16x8xf32>
    %14 = tpu.matmul %13, %12, %cst_10 {dimension_numbers = #tpu.dot_dimension_numbers<[1], [0], [0], [1], [0, 0, 1, 1], [], []>} : vector<16x32xf32>, vector<32x8xf32>, vector<16x8xf32> -> vector<16x8xf32>
    %c0_11 = arith.constant 0 : index
    %c0_12 = arith.constant 0 : index
    %15 = vector.load %arg6[%c0_11, %c0_12] : memref<8x16xf32, #tpu.memory_space<vmem>>, vector<8x16xf32>
    %cst_13 = arith.constant dense<0.000000e+00> : vector<16x16xf32>
    %16 = tpu.matmul %14, %15, %cst_13 {dimension_numbers = #tpu.dot_dimension_numbers<[1], [0], [0], [1], [0, 0, 1, 1], [], []>} : vector<16x8xf32>, vector<8x16xf32>, vector<16x16xf32> -> vector<16x16xf32>
    %17 = vector.broadcast %2 : f32 to vector<16x16xf32>
    %18 = arith.addf %16, %17 : vector<16x16xf32>
    %c0_14 = arith.constant 0 : index
    %c0_15 = arith.constant 0 : index
    %c0_16 = arith.constant 0 : index
    %19 = vector.load %arg19[%c0_14, %c0_15, %c0_16] : memref<1x128x16xf32, #tpu.memory_space<vmem>>, vector<1x16x16xf32>
    %20 = vector.shape_cast %19 : vector<1x16x16xf32> to vector<16x16xf32>
    %21 = vector.shape_cast %18 : vector<16x16xf32> to vector<1x16x16xf32>
    tpu.vector_store %arg19[%c0_14, %c0_15, %c0_16], %21 {strides = array<i32>} : memref<1x128x16xf32, #tpu.memory_space<vmem>>, vector<1x16x16xf32>,
    %c0_17 = arith.constant 0 : index
    %c0_18 = arith.constant 0 : index
    %22 = vector.load %arg7[%c0_17, %c0_18] : memref<60x64xf32, #tpu.memory_space<vmem>>, vector<60x64xf32>
    %cst_19 = arith.constant dense<0.000000e+00> : vector<60x16xf32>
    %23 = tpu.matmul %22, %1, %cst_19 {dimension_numbers = #tpu.dot_dimension_numbers<[1], [0], [0], [1], [0, 0, 1, 1], [], []>} : vector<60x64xf32>, vector<64x16xf32>, vector<60x16xf32> -> vector<60x16xf32>
    %24 = vector.extract_strided_slice %23 {offsets = [0, 0], sizes = [20, 16], strides = [1, 1]} : vector<60x16xf32> to vector<20x16xf32>
    %25 = vector.extract_strided_slice %23 {offsets = [20, 0], sizes = [20, 16], strides = [1, 1]} : vector<60x16xf32> to vector<20x16xf32>
    %26 = arith.maximumf %24, %25 : vector<20x16xf32>
    %27 = vector.extract_strided_slice %23 {offsets = [40, 0], sizes = [20, 16], strides = [1, 1]} : vector<60x16xf32> to vector<20x16xf32>
    %28 = arith.maximumf %26, %27 : vector<20x16xf32>
    %c0_20 = arith.constant 0 : index
    %c0_21 = arith.constant 0 : index
    %29 = vector.load %arg8[%c0_20, %c0_21] : memref<16x15xf32, #tpu.memory_space<vmem>>, vector<16x15xf32>
    %cst_22 = arith.constant dense<0.000000e+00> : vector<20x15xf32>
    %30 = tpu.matmul %28, %29, %cst_22 {dimension_numbers = #tpu.dot_dimension_numbers<[1], [0], [0], [1], [0, 0, 1, 1], [], []>} : vector<20x16xf32>, vector<16x15xf32>, vector<20x15xf32> -> vector<20x15xf32>
    %31 = vector.extract_strided_slice %30 {offsets = [0, 0], sizes = [20, 5], strides = [1, 1]} : vector<20x15xf32> to vector<20x5xf32>
    %32 = vector.extract_strided_slice %30 {offsets = [0, 5], sizes = [20, 5], strides = [1, 1]} : vector<20x15xf32> to vector<20x5xf32>
    %33 = arith.maximumf %31, %32 : vector<20x5xf32>
    %34 = vector.extract_strided_slice %30 {offsets = [0, 10], sizes = [20, 5], strides = [1, 1]} : vector<20x15xf32> to vector<20x5xf32>
    %35 = arith.maximumf %33, %34 : vector<20x5xf32>
    %c0_23 = arith.constant 0 : index
    %c0_24 = arith.constant 0 : index
    %36 = vector.load %arg9[%c0_23, %c0_24] : memref<16x20xf32, #tpu.memory_space<vmem>>, vector<16x20xf32>
    %cst_25 = arith.constant dense<0.000000e+00> : vector<16x5xf32>
    %37 = tpu.matmul %36, %35, %cst_25 {dimension_numbers = #tpu.dot_dimension_numbers<[1], [0], [0], [1], [0, 0, 1, 1], [], []>} : vector<16x20xf32>, vector<20x5xf32>, vector<16x5xf32> -> vector<16x5xf32>
    %c0_26 = arith.constant 0 : index
    %c0_27 = arith.constant 0 : index
    %38 = vector.load %arg10[%c0_26, %c0_27] : memref<5x16xf32, #tpu.memory_space<vmem>>, vector<5x16xf32>
    %cst_28 = arith.constant dense<0.000000e+00> : vector<16x16xf32>
    %39 = tpu.matmul %37, %38, %cst_28 {dimension_numbers = #tpu.dot_dimension_numbers<[1], [0], [0], [1], [0, 0, 1, 1], [], []>} : vector<16x5xf32>, vector<5x16xf32>, vector<16x16xf32> -> vector<16x16xf32>
    %40 = vector.broadcast %2 : f32 to vector<16x16xf32>
    %41 = arith.addf %39, %40 : vector<16x16xf32>
    %c0_29 = arith.constant 0 : index
    %c16 = arith.constant 16 : index
    %c0_30 = arith.constant 0 : index
    %42 = vector.load %arg19[%c0_29, %c16, %c0_30] : memref<1x128x16xf32, #tpu.memory_space<vmem>>, vector<1x16x16xf32>
    %43 = vector.shape_cast %42 : vector<1x16x16xf32> to vector<16x16xf32>
    %44 = vector.shape_cast %41 : vector<16x16xf32> to vector<1x16x16xf32>
    tpu.vector_store %arg19[%c0_29, %c16, %c0_30], %44 {strides = array<i32>} : memref<1x128x16xf32, #tpu.memory_space<vmem>>, vector<1x16x16xf32>,
    %c0_31 = arith.constant 0 : index
    %c0_32 = arith.constant 0 : index
    %45 = vector.load %arg11[%c0_31, %c0_32] : memref<60x64xf32, #tpu.memory_space<vmem>>, vector<60x64xf32>
    %cst_33 = arith.constant dense<0.000000e+00> : vector<60x16xf32>
    %46 = tpu.matmul %45, %1, %cst_33 {dimension_numbers = #tpu.dot_dimension_numbers<[1], [0], [0], [1], [0, 0, 1, 1], [], []>} : vector<60x64xf32>, vector<64x16xf32>, vector<60x16xf32> -> vector<60x16xf32>
    %47 = vector.extract_strided_slice %46 {offsets = [0, 0], sizes = [12, 16], strides = [1, 1]} : vector<60x16xf32> to vector<12x16xf32>
    %48 = vector.extract_strided_slice %46 {offsets = [12, 0], sizes = [12, 16], strides = [1, 1]} : vector<60x16xf32> to vector<12x16xf32>
    %49 = arith.maximumf %47, %48 : vector<12x16xf32>
    %50 = vector.extract_strided_slice %46 {offsets = [24, 0], sizes = [12, 16], strides = [1, 1]} : vector<60x16xf32> to vector<12x16xf32>
    %51 = arith.maximumf %49, %50 : vector<12x16xf32>
    %52 = vector.extract_strided_slice %46 {offsets = [36, 0], sizes = [12, 16], strides = [1, 1]} : vector<60x16xf32> to vector<12x16xf32>
    %53 = arith.maximumf %51, %52 : vector<12x16xf32>
    %54 = vector.extract_strided_slice %46 {offsets = [48, 0], sizes = [12, 16], strides = [1, 1]} : vector<60x16xf32> to vector<12x16xf32>
    %55 = arith.maximumf %53, %54 : vector<12x16xf32>
    %c0_34 = arith.constant 0 : index
    %c0_35 = arith.constant 0 : index
    %56 = vector.load %arg12[%c0_34, %c0_35] : memref<16x15xf32, #tpu.memory_space<vmem>>, vector<16x15xf32>
    %cst_36 = arith.constant dense<0.000000e+00> : vector<12x15xf32>
    %57 = tpu.matmul %55, %56, %cst_36 {dimension_numbers = #tpu.dot_dimension_numbers<[1], [0], [0], [1], [0, 0, 1, 1], [], []>} : vector<12x16xf32>, vector<16x15xf32>, vector<12x15xf32> -> vector<12x15xf32>
    %58 = vector.extract_strided_slice %57 {offsets = [0, 0], sizes = [12, 3], strides = [1, 1]} : vector<12x15xf32> to vector<12x3xf32>
    %59 = vector.extract_strided_slice %57 {offsets = [0, 3], sizes = [12, 3], strides = [1, 1]} : vector<12x15xf32> to vector<12x3xf32>
    %60 = arith.maximumf %58, %59 : vector<12x3xf32>
    %61 = vector.extract_strided_slice %57 {offsets = [0, 6], sizes = [12, 3], strides = [1, 1]} : vector<12x15xf32> to vector<12x3xf32>
    %62 = arith.maximumf %60, %61 : vector<12x3xf32>
    %63 = vector.extract_strided_slice %57 {offsets = [0, 9], sizes = [12, 3], strides = [1, 1]} : vector<12x15xf32> to vector<12x3xf32>
    %64 = arith.maximumf %62, %63 : vector<12x3xf32>
    %65 = vector.extract_strided_slice %57 {offsets = [0, 12], sizes = [12, 3], strides = [1, 1]} : vector<12x15xf32> to vector<12x3xf32>
    %66 = arith.maximumf %64, %65 : vector<12x3xf32>
    %c0_37 = arith.constant 0 : index
    %c0_38 = arith.constant 0 : index
    %67 = vector.load %arg13[%c0_37, %c0_38] : memref<16x12xf32, #tpu.memory_space<vmem>>, vector<16x12xf32>
    %cst_39 = arith.constant dense<0.000000e+00> : vector<16x3xf32>
    %68 = tpu.matmul %67, %66, %cst_39 {dimension_numbers = #tpu.dot_dimension_numbers<[1], [0], [0], [1], [0, 0, 1, 1], [], []>} : vector<16x12xf32>, vector<12x3xf32>, vector<16x3xf32> -> vector<16x3xf32>
    %c0_40 = arith.constant 0 : index
    %c0_41 = arith.constant 0 : index
    %69 = vector.load %arg14[%c0_40, %c0_41] : memref<3x16xf32, #tpu.memory_space<vmem>>, vector<3x16xf32>
    %cst_42 = arith.constant dense<0.000000e+00> : vector<16x16xf32>
    %70 = tpu.matmul %68, %69, %cst_42 {dimension_numbers = #tpu.dot_dimension_numbers<[1], [0], [0], [1], [0, 0, 1, 1], [], []>} : vector<16x3xf32>, vector<3x16xf32>, vector<16x16xf32> -> vector<16x16xf32>
    %71 = vector.broadcast %2 : f32 to vector<16x16xf32>
    %72 = arith.addf %70, %71 : vector<16x16xf32>
    %c0_43 = arith.constant 0 : index
    %c32 = arith.constant 32 : index
    %c0_44 = arith.constant 0 : index
    %73 = vector.load %arg19[%c0_43, %c32, %c0_44] : memref<1x128x16xf32, #tpu.memory_space<vmem>>, vector<1x16x16xf32>
    %74 = vector.shape_cast %73 : vector<1x16x16xf32> to vector<16x16xf32>
    %75 = vector.shape_cast %72 : vector<16x16xf32> to vector<1x16x16xf32>
    tpu.vector_store %arg19[%c0_43, %c32, %c0_44], %75 {strides = array<i32>} : memref<1x128x16xf32, #tpu.memory_space<vmem>>, vector<1x16x16xf32>,
    %c0_45 = arith.constant 0 : index
    %c0_46 = arith.constant 0 : index
    %76 = vector.load %arg15[%c0_45, %c0_46] : memref<48x64xf32, #tpu.memory_space<vmem>>, vector<48x64xf32>
    %cst_47 = arith.constant dense<0.000000e+00> : vector<48x16xf32>
    %77 = tpu.matmul %76, %1, %cst_47 {dimension_numbers = #tpu.dot_dimension_numbers<[1], [0], [0], [1], [0, 0, 1, 1], [], []>} : vector<48x64xf32>, vector<64x16xf32>, vector<48x16xf32> -> vector<48x16xf32>
    %78 = vector.extract_strided_slice %77 {offsets = [0, 0], sizes = [8, 16], strides = [1, 1]} : vector<48x16xf32> to vector<8x16xf32>
    %79 = vector.extract_strided_slice %77 {offsets = [8, 0], sizes = [8, 16], strides = [1, 1]} : vector<48x16xf32> to vector<8x16xf32>
    %80 = arith.maximumf %78, %79 : vector<8x16xf32>
    %81 = vector.extract_strided_slice %77 {offsets = [16, 0], sizes = [8, 16], strides = [1, 1]} : vector<48x16xf32> to vector<8x16xf32>
    %82 = arith.maximumf %80, %81 : vector<8x16xf32>
    %83 = vector.extract_strided_slice %77 {offsets = [24, 0], sizes = [8, 16], strides = [1, 1]} : vector<48x16xf32> to vector<8x16xf32>
    %84 = arith.maximumf %82, %83 : vector<8x16xf32>
    %85 = vector.extract_strided_slice %77 {offsets = [32, 0], sizes = [8, 16], strides = [1, 1]} : vector<48x16xf32> to vector<8x16xf32>
    %86 = arith.maximumf %84, %85 : vector<8x16xf32>
    %87 = vector.extract_strided_slice %77 {offsets = [40, 0], sizes = [8, 16], strides = [1, 1]} : vector<48x16xf32> to vector<8x16xf32>
    %88 = arith.maximumf %86, %87 : vector<8x16xf32>
    %c0_48 = arith.constant 0 : index
    %c0_49 = arith.constant 0 : index
    %89 = vector.load %arg16[%c0_48, %c0_49] : memref<16x12xf32, #tpu.memory_space<vmem>>, vector<16x12xf32>
    %cst_50 = arith.constant dense<0.000000e+00> : vector<8x12xf32>
    %90 = tpu.matmul %88, %89, %cst_50 {dimension_numbers = #tpu.dot_dimension_numbers<[1], [0], [0], [1], [0, 0, 1, 1], [], []>} : vector<8x16xf32>, vector<16x12xf32>, vector<8x12xf32> -> vector<8x12xf32>
    %91 = vector.extract_strided_slice %90 {offsets = [0, 0], sizes = [8, 2], strides = [1, 1]} : vector<8x12xf32> to vector<8x2xf32>
    %92 = vector.extract_strided_slice %90 {offsets = [0, 2], sizes = [8, 2], strides = [1, 1]} : vector<8x12xf32> to vector<8x2xf32>
    %93 = arith.maximumf %91, %92 : vector<8x2xf32>
    %94 = vector.extract_strided_slice %90 {offsets = [0, 4], sizes = [8, 2], strides = [1, 1]} : vector<8x12xf32> to vector<8x2xf32>
    %95 = arith.maximumf %93, %94 : vector<8x2xf32>
    %96 = vector.extract_strided_slice %90 {offsets = [0, 6], sizes = [8, 2], strides = [1, 1]} : vector<8x12xf32> to vector<8x2xf32>
    %97 = arith.maximumf %95, %96 : vector<8x2xf32>
    %98 = vector.extract_strided_slice %90 {offsets = [0, 8], sizes = [8, 2], strides = [1, 1]} : vector<8x12xf32> to vector<8x2xf32>
    %99 = arith.maximumf %97, %98 : vector<8x2xf32>
    %100 = vector.extract_strided_slice %90 {offsets = [0, 10], sizes = [8, 2], strides = [1, 1]} : vector<8x12xf32> to vector<8x2xf32>
    %101 = arith.maximumf %99, %100 : vector<8x2xf32>
    %c0_51 = arith.constant 0 : index
    %c0_52 = arith.constant 0 : index
    %102 = vector.load %arg17[%c0_51, %c0_52] : memref<16x8xf32, #tpu.memory_space<vmem>>, vector<16x8xf32>
    %cst_53 = arith.constant dense<0.000000e+00> : vector<16x2xf32>
    %103 = tpu.matmul %102, %101, %cst_53 {dimension_numbers = #tpu.dot_dimension_numbers<[1], [0], [0], [1], [0, 0, 1, 1], [], []>} : vector<16x8xf32>, vector<8x2xf32>, vector<16x2xf32> -> vector<16x2xf32>
    %c0_54 = arith.constant 0 : index
    %c0_55 = arith.constant 0 : index
    %104 = vector.load %arg18[%c0_54, %c0_55] : memref<2x16xf32, #tpu.memory_space<vmem>>, vector<2x16xf32>
    %cst_56 = arith.constant dense<0.000000e+00> : vector<16x16xf32>
    %105 = tpu.matmul %103, %104, %cst_56 {dimension_numbers = #tpu.dot_dimension_numbers<[1], [0], [0], [1], [0, 0, 1, 1], [], []>} : vector<16x2xf32>, vector<2x16xf32>, vector<16x16xf32> -> vector<16x16xf32>
    %106 = vector.broadcast %2 : f32 to vector<16x16xf32>
    %107 = arith.addf %105, %106 : vector<16x16xf32>
    %c0_57 = arith.constant 0 : index
    %c48 = arith.constant 48 : index
    %c0_58 = arith.constant 0 : index
    %108 = vector.load %arg19[%c0_57, %c48, %c0_58] : memref<1x128x16xf32, #tpu.memory_space<vmem>>, vector<1x16x16xf32>
    %109 = vector.shape_cast %108 : vector<1x16x16xf32> to vector<16x16xf32>
    %110 = vector.shape_cast %107 : vector<16x16xf32> to vector<1x16x16xf32>
    tpu.vector_store %arg19[%c0_57, %c48, %c0_58], %110 {strides = array<i32>} : memref<1x128x16xf32, #tpu.memory_space<vmem>>, vector<1x16x16xf32>,
    %c0_59 = arith.constant 0 : index
    %c64 = arith.constant 64 : index
    %c0_60 = arith.constant 0 : index
    %111 = vector.load %arg19[%c0_59, %c64, %c0_60] : memref<1x128x16xf32, #tpu.memory_space<vmem>>, vector<1x64x16xf32>
    %112 = vector.shape_cast %111 : vector<1x64x16xf32> to vector<64x16xf32>
    %113 = vector.shape_cast %1 : vector<64x16xf32> to vector<1x64x16xf32>
    tpu.vector_store %arg19[%c0_59, %c64, %c0_60], %113 {strides = array<i32>} : memref<1x128x16xf32, #tpu.memory_space<vmem>>, vector<1x64x16xf32>,
    return
  }
  func.func @transform_0(%arg0: i32) -> (i32, i32, i32) {
    %c0_i32 = arith.constant 0 : i32
    %c0_i32_0 = arith.constant 0 : i32
    %c0_i32_1 = arith.constant 0 : i32
    return %arg0, %c0_i32, %c0_i32_0 : i32, i32, i32
  }
  func.func @transform_1(%arg0: i32) -> i32 {
    %c0_i32 = arith.constant 0 : i32
    %c0_i32_0 = arith.constant 0 : i32
    return %c0_i32 : i32
  }
  func.func @transform_2(%arg0: i32) -> (i32, i32) {
    %c0_i32 = arith.constant 0 : i32
    %c0_i32_0 = arith.constant 0 : i32
    %c0_i32_1 = arith.constant 0 : i32
    return %c0_i32, %c0_i32_0 : i32, i32
  }
  func.func @transform_3(%arg0: i32) -> (i32, i32) {
    %c0_i32 = arith.constant 0 : i32
    %c0_i32_0 = arith.constant 0 : i32
    %c0_i32_1 = arith.constant 0 : i32
    return %c0_i32, %c0_i32_0 : i32, i32
  }
  func.func @transform_4(%arg0: i32) -> (i32, i32) {
    %c0_i32 = arith.constant 0 : i32
    %c0_i32_0 = arith.constant 0 : i32
    %c0_i32_1 = arith.constant 0 : i32
    return %c0_i32, %c0_i32_0 : i32, i32
  }
  func.func @transform_5(%arg0: i32) -> (i32, i32) {
    %c0_i32 = arith.constant 0 : i32
    %c0_i32_0 = arith.constant 0 : i32
    %c0_i32_1 = arith.constant 0 : i32
    return %c0_i32, %c0_i32_0 : i32, i32
  }
  func.func @transform_6(%arg0: i32) -> (i32, i32) {
    %c0_i32 = arith.constant 0 : i32
    %c0_i32_0 = arith.constant 0 : i32
    %c0_i32_1 = arith.constant 0 : i32
    return %c0_i32, %c0_i32_0 : i32, i32
  }
  func.func @transform_7(%arg0: i32) -> (i32, i32) {
    %c0_i32 = arith.constant 0 : i32
    %c0_i32_0 = arith.constant 0 : i32
    %c0_i32_1 = arith.constant 0 : i32
    return %c0_i32, %c0_i32_0 : i32, i32
  }
  func.func @transform_8(%arg0: i32) -> (i32, i32) {
    %c0_i32 = arith.constant 0 : i32
    %c0_i32_0 = arith.constant 0 : i32
    %c0_i32_1 = arith.constant 0 : i32
    return %c0_i32, %c0_i32_0 : i32, i32
  }
  func.func @transform_9(%arg0: i32) -> (i32, i32) {
    %c0_i32 = arith.constant 0 : i32
    %c0_i32_0 = arith.constant 0 : i32
    %c0_i32_1 = arith.constant 0 : i32
    return %c0_i32, %c0_i32_0 : i32, i32
  }
  func.func @transform_10(%arg0: i32) -> (i32, i32) {
    %c0_i32 = arith.constant 0 : i32
    %c0_i32_0 = arith.constant 0 : i32
    %c0_i32_1 = arith.constant 0 : i32
    return %c0_i32, %c0_i32_0 : i32, i32
  }
  func.func @transform_11(%arg0: i32) -> (i32, i32) {
    %c0_i32 = arith.constant 0 : i32
    %c0_i32_0 = arith.constant 0 : i32
    %c0_i32_1 = arith.constant 0 : i32
    return %c0_i32, %c0_i32_0 : i32, i32
  }
  func.func @transform_12(%arg0: i32) -> (i32, i32) {
    %c0_i32 = arith.constant 0 : i32
    %c0_i32_0 = arith.constant 0 : i32
    %c0_i32_1 = arith.constant 0 : i32
    return %c0_i32, %c0_i32_0 : i32, i32
  }
  func.func @transform_13(%arg0: i32) -> (i32, i32) {
    %c0_i32 = arith.constant 0 : i32
    %c0_i32_0 = arith.constant 0 : i32
    %c0_i32_1 = arith.constant 0 : i32
    return %c0_i32, %c0_i32_0 : i32, i32
  }
  func.func @transform_14(%arg0: i32) -> (i32, i32) {
    %c0_i32 = arith.constant 0 : i32
    %c0_i32_0 = arith.constant 0 : i32
    %c0_i32_1 = arith.constant 0 : i32
    return %c0_i32, %c0_i32_0 : i32, i32
  }
  func.func @transform_15(%arg0: i32) -> (i32, i32) {
    %c0_i32 = arith.constant 0 : i32
    %c0_i32_0 = arith.constant 0 : i32
    %c0_i32_1 = arith.constant 0 : i32
    return %c0_i32, %c0_i32_0 : i32, i32
  }
  func.func @transform_16(%arg0: i32) -> (i32, i32) {
    %c0_i32 = arith.constant 0 : i32
    %c0_i32_0 = arith.constant 0 : i32
    %c0_i32_1 = arith.constant 0 : i32
    return %c0_i32, %c0_i32_0 : i32, i32
  }
  func.func @transform_17(%arg0: i32) -> (i32, i32) {
    %c0_i32 = arith.constant 0 : i32
    %c0_i32_0 = arith.constant 0 : i32
    %c0_i32_1 = arith.constant 0 : i32
    return %c0_i32, %c0_i32_0 : i32, i32
  }
  func.func @transform_18(%arg0: i32) -> (i32, i32, i32) {
    %c0_i32 = arith.constant 0 : i32
    %c0_i32_0 = arith.constant 0 : i32
    %c0_i32_1 = arith.constant 0 : i32
    return %arg0, %c0_i32, %c0_i32_0 : i32, i32, i32
  }
}

</mosaic_0001>

<bundles_post_ra>
// kernel: tpu_custom_call.1
= control target key start
LH: loop header
LB: loop body
LE: loop exit
PB: predicated region body
PF: predicated region fallthrough
CT: control target
= control target key end

     0   :  { %s2978_s0 = inlined_call_operand.vmem [shape: f32[2,64,16], index: 0, kind: input, shape index: {}]   ;;  %s2979_s1 = inlined_call_operand.<no memory space> [shape: f32[1], index: 1, kind: input, shape index: {}]   ;;  %s2980_s2 = inlined_call_operand.vmem [shape: f32[64,64], index: 2, kind: input, shape index: {}]   ;;  %s2981_s3 = inlined_call_operand.hbm [shape: f32[16,16], index: 3, kind: input, shape index: {}]   ;;  %s2982_s4 = inlined_call_operand.hbm [shape: f32[16,32], index: 4, kind: input, shape index: {}]   ;;  %s2983_s5 = inlined_call_operand.hbm [shape: f32[8,16], index: 5, kind: input, shape index: {}]   ;;  %s2984_s6 = inlined_call_operand.vmem [shape: f32[60,64], index: 6, kind: input, shape index: {}]   ;;  %s2985_s7 = inlined_call_operand.hbm [shape: f32[16,15], index: 7, kind: input, shape index: {}]   ;;  %s2986_s8 = inlined_call_operand.hbm [shape: f32[16,20], index: 8, kind: input, shape index: {}]   ;;  %s2987_s9 = inlined_call_operand.hbm [shape: f32[5,16], index: 9, kind: input, shape index: {}]   ;;  %s2988_s10 = inlined_call_operand.vmem [shape: f32[60,64], index: 10, kind: input, shape index: {}]   ;;  %s2989_s11 = inlined_call_operand.hbm [shape: f32[16,15], index: 11, kind: input, shape index: {}]   ;;  %s2990_s12 = inlined_call_operand.hbm [shape: f32[16,12], index: 12, kind: input, shape index: {}]   ;;  %s2991_s13 = inlined_call_operand.hbm [shape: f32[3,16], index: 13, kind: input, shape index: {}]   ;;  %s2992_s14 = inlined_call_operand.hbm [shape: f32[48,64], index: 14, kind: input, shape index: {}]   ;;  %s2993_s15 = inlined_call_operand.hbm [shape: f32[16,12], index: 15, kind: input, shape index: {}]   ;;  %s2994_s16 = inlined_call_operand.vmem [shape: f32[16,8], index: 16, kind: input, shape index: {}]   ;;  %s2995_s17 = inlined_call_operand.hbm [shape: f32[2,16], index: 17, kind: input, shape index: {}]   ;;  %s2996_s18 = inlined_call_operand.vmem [shape: f32[2,128,16], index: 18, kind: output, shape index: {}]  }
   0x1   :  { %2999 = sst [smem:[#allocation30_spill]] %s2978_s0 }
   0x2   :  { %3000 = sst [smem:[#allocation31_spill]] %s2979_s1 }
   0x3   :  { %3001 = sst [smem:[#allocation32_spill]] %s2980_s2 }
   0x4   :  { %3002 = sst [smem:[#allocation33_spill]] %s2982_s4 }
   0x5   :  { %3003 = sst [smem:[#allocation34_spill]] %s2985_s7 }
   0x6   :  { %3004 = sst [smem:[#allocation35_spill]] %s2987_s9 }
   0x7   :  { %s3005_s29 = sld [smem:[#allocation31_spill]] }
   0xd   :  { %23 = sst [smem:[#allocation2]] %s3005_s29 }
   0xe   :  { %24 = vsyncpa [#allocation4], 0 }
   0xf   :  { %25 = vsyncpa [#allocation6], 0 }
  0x10   :  { %26 = vsyncpa [#allocation9], 0 }
  0x11   :  { %27 = vsyncpa [#allocation12], 0 }
  0x12   :  { %28 = vsyncpa [#allocation15], 0 }
  0x13   :  { %29 = vsyncpa [#allocation18], 0 }
  0x14   :  { %30 = vsyncpa [#allocation21], 0  ;;  %s2585_s30 = smov 0  }
  0x15 LB: > { %3006 = sst [smem:[#allocation29_spill]] %s2462_s30  ;;  %s2591_s0 = sadd.s32 4294967295, %s2462_s30   ;;  %s2462_s30 = sphi %s2585_s30, %s36_s30  }
  0x16   : > { %p1804_p0 = scmp.ge.s32.totalorder %s2462_s30, 1  ;;  %p450_p1 = scmp.lt.s32.totalorder %s2462_s30, 3 }
  0x17   : > { %p1993_p2 = scmp.eq.s32.totalorder %s2591_s0, 0  ;;  %s3007_s4 = sld [smem:[#allocation33_spill]] }
  0x18   : > { %p2599_p3 = pnand %p1804_p0, %p450_p1  ;;  %s3009_s7 = sld [smem:[#allocation34_spill]] }
  0x19   : > { %s2464_s24 = smov [#allocation5]   ;;  %s2465_s27 = smov [#allocation8]  }
  0x1a   : > { %p1956_p4 = pneg %p2599_p3  ;;  %s483_s25 = sshll.u32 %s2464_s24, 4  ;;  %s484_s25 = int_to_ptr.vmem [resolvable:$true] %s483_s25 }
  0x1b   : > { %s512_s28 = sshll.u32 %s2465_s27, 4  ;;  %s3011_s9 = sld [smem:[#allocation35_spill]]  ;;  %s513_s28 = int_to_ptr.vmem [resolvable:$true] %s512_s28 }
  0x1c   : > { %p2610_p5 = pnand %p1993_p2, %p1956_p4  ;;  %s2466_s22 = smov 128  }
  0x1d   : > { %s481_s20 = sshll.u32 %s3007_s4, 4  ;;  %s2467_s2 = smov 8   ;;  %s482_s20 = int_to_ptr.hbm [resolvable:$true] %s481_s20 }
  0x1e   : > { %s510_s23 = sshll.u32 %s3009_s7, 4  ;;  %s2468_s24 = smov [#allocation11]   ;;  %s511_s23 = int_to_ptr.hbm [resolvable:$true] %s510_s23 }
  0x1f   : > { %1962 = dma.hbm_to_vmem [thread:$0]  (!%p2610_p5), %s482_s20, 256, %s484_s25, [#allocation6], %s2466_s22, %s2466_s22, %s2467_s2  }
  0x20   : > { %1968 = dma.hbm_to_vmem [thread:$0]  (!%p2610_p5), %s511_s23, 256, %s513_s28, [#allocation9], %s2466_s22, %s2466_s22, %s2467_s2  }
  0x21   : > { %s539_s1 = sshll.u32 %s3011_s9, 4  ;;  %s541_s27 = sshll.u32 %s2468_s24, 4  ;;  %s540_s1 = int_to_ptr.hbm [resolvable:$true] %s539_s1  ;;  %s542_s27 = int_to_ptr.vmem [resolvable:$true] %s541_s27 }
  0x22   : > { %s567_s19 = sshll.u32 %s2990_s12, 4  ;;  %s593_s20 = sshll.u32 %s2992_s14, 4  ;;  %s568_s19 = int_to_ptr.hbm [resolvable:$true] %s567_s19  ;;  %s594_s20 = int_to_ptr.hbm [resolvable:$true] %s593_s20 }
  0x23   : > { %1974 = dma.hbm_to_vmem [thread:$0]  (!%p2610_p5), %s540_s1, 128, %s542_s27, [#allocation12]  }
  0x24   : > { %s2469_s25 = smov [#allocation14]   ;;  %s2470_s4 = smov [#allocation17]  }
  0x25   : > { %s569_s30 = sshll.u32 %s2469_s25, 4  ;;  %s595_s23 = sshll.u32 %s2470_s4, 4  ;;  %s570_s30 = int_to_ptr.vmem [resolvable:$true] %s569_s30  ;;  %s596_s23 = int_to_ptr.vmem [resolvable:$true] %s595_s23 }
  0x26   : > { %1980 = dma.hbm_to_vmem [thread:$0]  (!%p2610_p5), %s568_s19, 256, %s570_s30, [#allocation15], %s2466_s22, %s2466_s22, %s2467_s2  }
  0x27   : > { %s467_s1 = sshll.u32 %s2981_s3, 4  ;;  %s496_s27 = sshll.u32 %s2983_s5, 4  ;;  %s468_s1 = int_to_ptr.hbm [resolvable:$true] %s467_s1  ;;  %s497_s27 = int_to_ptr.hbm [resolvable:$true] %s496_s27 }
  0x28   : > { %1986 = dma.hbm_to_vmem [thread:$0]  (!%p2610_p5), %s594_s20, 768, %s596_s23, [#allocation18], %s2466_s22, %s2466_s22, %s2467_s2  }
  0x29   : > { %s2471_s29 = smov [#allocation3]   ;;  %s2472_s19 = smov [#allocation7]  }
  0x2a   : > { %s469_s30 = sshll.u32 %s2471_s29, 4  ;;  %s498_s25 = sshll.u32 %s2472_s19, 4  ;;  %s470_s30 = int_to_ptr.vmem [resolvable:$true] %s469_s30  ;;  %s499_s25 = int_to_ptr.vmem [resolvable:$true] %s498_s25 }
  0x2b   : > { %1959 = dma.hbm_to_vmem [thread:$0]  (!%p2610_p5), %s468_s1, 256, %s470_s30, [#allocation4], %s2466_s22, %s2466_s22, %s2467_s2  }
  0x2c   : > { %s524_s20 = sshll.u32 %s2986_s8, 4  ;;  %s553_s7 = sshll.u32 %s2989_s11, 4  ;;  %s525_s20 = int_to_ptr.hbm [resolvable:$true] %s524_s20  ;;  %s554_s7 = int_to_ptr.hbm [resolvable:$true] %s553_s7 }
  0x2d   : > { %1965 = dma.hbm_to_vmem [thread:$0]  (!%p2610_p5), %s497_s27, 128, %s499_s25, [#allocation6]  }
  0x2e   : > { %s2473_s9 = smov [#allocation10]   ;;  %s2474_s1 = smov [#allocation13]  }
  0x2f   : > { %s526_s29 = sshll.u32 %s2473_s9, 4  ;;  %s555_s30 = sshll.u32 %s2474_s1, 4  ;;  %s527_s29 = int_to_ptr.vmem [resolvable:$true] %s526_s29  ;;  %s556_s30 = int_to_ptr.vmem [resolvable:$true] %s555_s30 }
  0x30   : > { %1971 = dma.hbm_to_vmem [thread:$0]  (!%p2610_p5), %s525_s20, 256, %s527_s29, [#allocation9], %s2466_s22, %s2466_s22, %s2467_s2  }
  0x31   : > { %s582_s27 = sshll.u32 %s2991_s13, 4  ;;  %s607_s23 = sshll.u32 %s2993_s15, 4  ;;  %s583_s27 = int_to_ptr.hbm [resolvable:$true] %s582_s27  ;;  %s608_s23 = int_to_ptr.hbm [resolvable:$true] %s607_s23 }
  0x32   : > { %1977 = dma.hbm_to_vmem [thread:$0]  (!%p2610_p5), %s554_s7, 256, %s556_s30, [#allocation12], %s2466_s22, %s2466_s22, %s2467_s2  }
  0x33   : > { %s2475_s20 = smov [#allocation16]   ;;  %s2476_s9 = smov [#allocation19]  }
  0x34   : > { %s584_s24 = sshll.u32 %s2475_s20, 4  ;;  %s609_s29 = sshll.u32 %s2476_s9, 4  ;;  %s585_s24 = int_to_ptr.vmem [resolvable:$true] %s584_s24  ;;  %s610_s29 = int_to_ptr.vmem [resolvable:$true] %s609_s29 }
  0x35   : > { %1983 = dma.hbm_to_vmem [thread:$0]  (!%p2610_p5), %s583_s27, 64, %s585_s24, [#allocation15]  }
  0x36   : > { %s625_s4 = sshll.u32 %s2995_s17, 4  ;;  %s2477_s7 = smov [#allocation20]   ;;  %s626_s4 = int_to_ptr.hbm [resolvable:$true] %s625_s4 }
  0x37   : > { %1989 = dma.hbm_to_vmem [thread:$0]  (!%p2610_p5), %s608_s23, 256, %s610_s29, [#allocation18], %s2466_s22, %s2466_s22, %s2467_s2  }
  0x38   : > { %s627_s30 = sshll.u32 %s2477_s7, 4  ;;  %648 = sbr.rel (%p2599_p3) target bundleno = 2131 (0x853), region = 92  ;;  %s628_s30 = int_to_ptr.vmem [resolvable:$true] %s627_s30 }
  0x39   : > { %1992 = dma.hbm_to_vmem [thread:$0]  (!%p2610_p5), %s626_s4, 32, %s628_s30, [#allocation21]  }
  0x3d   : > { %2433 = dma.done.wait (%p1993_p2), [#allocation4], 256  }
  0x3e   : > { %2435 = vsyncadd (%p1993_p2), [#allocation4], 4294967040 }
  0x3f   : > { %2437 = dma.done.wait (%p1993_p2), [#allocation6], 384  }
  0x40   : > { %2439 = vsyncadd (%p1993_p2), [#allocation6], 4294966912 }
  0x41   : > { %2441 = dma.done.wait (%p1993_p2), [#allocation9], 512  }
  0x42   : > { %2443 = vsyncadd (%p1993_p2), [#allocation9], 4294966784 }
  0x43   : > { %2445 = dma.done.wait (%p1993_p2), [#allocation12], 384  }
  0x44   : > { %2447 = vsyncadd (%p1993_p2), [#allocation12], 4294966912 }
  0x45   : > { %2449 = dma.done.wait (%p1993_p2), [#allocation15], 320  }
  0x46   : > { %2451 = vsyncadd (%p1993_p2), [#allocation15], 4294966976 }
  0x47   : > { %2453 = dma.done.wait (%p1993_p2), [#allocation18], 1024  }
  0x48   : > { %2455 = vsyncadd (%p1993_p2), [#allocation18], 4294966272 }
  0x49   : > { %2457 = dma.done.wait (%p1993_p2), [#allocation21], 32  }
  0x4a   : > { %2459 = vsyncadd (%p1993_p2), [#allocation21], 4294967264  ;;  %p758_p6 = scmp.lt.s32.totalorder %s2591_s0, 1  ;;  %s3012_s27 = sld [smem:[#allocation30_spill]]  ;;  %vm857_vm0 = vcmask 130048   ;;  %vm785_vm1 = vcmask 523264  }
  0x4b   : > { %s3013_s9 = sld [smem:[#allocation32_spill]]  ;;  %v856_v16 = vld [vmem:[#allocation3 + $0x8] sm:$0xff]  ;;  %v855_v18 = vld [vmem:[#allocation3] sm:$0xff]  ;;  %v919_v46 = vld [vmem:[#allocation5] sm:$0xff]  ;;  %vm921_vm2 = vcmask 261120   ;;  %vm953_vm3 = vcmask 64512  }
  0x4c   : > { %s3016_s0 = smov (!%p758_p6, %s2591_s0), 1  ;;  %884 = vmatpush.msra.mxu1 %v856_v16  ;;  %v920_v47 = vld [vmem:[#allocation5 + $0x8] sm:$0xff]  ;;  %v951_v48 = vld [vmem:[#allocation7] sm:$0xff]  ;;  %v986_v52 = vld [vmem:[%s2984_s6 + $0x8] sm:$0xff]  ;;  %s776_s29 = sld [smem:[#allocation2]]  ;;  %vm1061_vm4 = vcmask 1043456  }
  0x4d   : > { %s1898_s21 = sshll.u32 %s3016_s0, 6  ;;  %s1899_s26 = sshll.u32 %s3016_s0, 7  ;;  %975 = vmatpush.msra.mxu3 %v951_v48  ;;  %v985_v50 = vld [vmem:[%s2984_s6] sm:$0xff]  ;;  %v987_v53 = vld [vmem:[%s2984_s6 + $0x10] sm:$0xff]  ;;  %v988_v54 = vld [vmem:[%s2984_s6 + $0x18] sm:$0xff]  ;;  %vm1142_vm5 = vcmask 162816  }
  0x4e   : > { %s2730_s20 = scalar_lea.vmem %s2996_s18, %s1899_s26  ;;  %885 = vmatpush.msra.mxu1 %v855_v18  ;;  %s2478_s0 = smov 120   ;;  %v989_v55 = vld [vmem:[%s2984_s6 + $0x20] sm:$0xff]  ;;  %v990_v56 = vld [vmem:[%s2984_s6 + $0x28] sm:$0xff]  ;;  %v991_v57 = vld [vmem:[%s2984_s6 + $0x30] sm:$0xff]  ;;  %vm1183_vm6 = vcmask 1044480   ;;  %vm1176_vm7 = vcmask 39936  }
  0x4f   : > { %v992_v58 = vld [vmem:[%s2984_s6 + $0x38] sm:$0xf]  ;;  %s2479_s1 = smov 118   ;;  %s2480_s19 = smov 123   ;;  %v1141_v48 = vld [vmem:[#allocation10 + $0x8] sm:$0xff]  ;;  %vm1374_vm8 = vcmask 97280  }
  0x50   : > { %s762_s25 = scalar_lea.vmem %s3012_s27, %s1898_s21  ;;  %s2481_s30 = smov 122   ;;  %vm1415_vm9 = vcmask 1042432   ;;  %vm1408_vm10 = vcmask 23552   ;;  %vm1593_vm11 = vcmask 1041408   ;;  %vm1586_vm12 = vcmask 15360  }
  0x51   : > { %v2732_v0 = vld [vmem:[%s762_s25 + $0x38] sm:$0xff]  ;;  %v2734_v1 = vld [vmem:[%s762_s25 + $0x30] sm:$0xff]  ;;  %v2743_v2 = vld [vmem:[%s762_s25 + $0x28] sm:$0xff]  ;;  %s2482_s21 = smov 125   ;;  %s2483_s26 = smov 119  }
  0x52   : > { %818 = vmatpush.msra.mxu0 %v2732_v0  ;;  %1629 = vst.msk [vmem:[%s2730_s20 + $0x78] sm:$0xff] %vm857_vm0, %v2732_v0  ;;  %v2749_v3 = vld [vmem:[%s762_s25 + $0x20] sm:$0xff]  ;;  %v2754_v4 = vld [vmem:[%s762_s25 + $0x18] sm:$0xff]  ;;  %v2760_v5 = vld [vmem:[%s762_s25 + $0x10] sm:$0xff]  ;;  %1900 = vmatpush.msrb.mxu3 %v2732_v0  ;;  %s2484_s22 = smov 116   ;;  %s2485_s2 = smov 124  }
  0x53   : > { %1628 = vst.msk [vmem:[%s2730_s20 + $0x70] sm:$0xff] %vm857_vm0, %v2734_v1  ;;  %v2765_v6 = vld [vmem:[%s762_s25 + $0x8] sm:$0xff]  ;;  %v2771_v7 = vld [vmem:[%s762_s25] sm:$0xff]  ;;  %v779_v10 = vld [vmem:[%s3013_s9 + $0x10] sm:$0xff]  ;;  %s2486_s27 = smov 126  }
  0x54   : > { %819 = vmatpush.msra.mxu0 %v2734_v1  ;;  %1627 = vst.msk [vmem:[%s2730_s20 + $0x68] sm:$0xff] %vm857_vm0, %v2743_v2  ;;  %v777_v8 = vld [vmem:[%s3013_s9] sm:$0xff]  ;;  %v778_v9 = vld [vmem:[%s3013_s9 + $0x8] sm:$0xff]  ;;  %v780_v11 = vld [vmem:[%s3013_s9 + $0x18] sm:$0xff]  ;;  %1901 = vmatpush.msrb.mxu3 %v2734_v1 }
  0x55   : > { %1626 = vst.msk [vmem:[%s2730_s20 + $0x60] sm:$0xff] %vm857_vm0, %v2749_v3  ;;  %v781_v12 = vld [vmem:[%s3013_s9 + $0x20] sm:$0xff]  ;;  %v782_v13 = vld [vmem:[%s3013_s9 + $0x28] sm:$0xff]  ;;  %v783_v14 = vld [vmem:[%s3013_s9 + $0x30] sm:$0xff] }
  0x56   : > { %820 = vmatpush.msra.mxu0 %v2743_v2  ;;  %1625 = vst.msk [vmem:[%s2730_s20 + $0x58] sm:$0xff] %vm857_vm0, %v2754_v4  ;;  %v784_v15 = vld [vmem:[%s3013_s9 + $0x38] sm:$0xff]  ;;  %1902 = vmatpush.msrb.mxu3 %v2743_v2  ;;  %v2876_v59 = vstv %s776_s29 }
  0x57   : > { %1624 = vst.msk [vmem:[%s2730_s20 + $0x50] sm:$0xff] %vm857_vm0, %v2760_v5 }
  0x58   : > { %821 = vmatpush.msra.mxu0 %v2749_v3  ;;  %1623 = vst.msk [vmem:[%s2730_s20 + $0x48] sm:$0xff] %vm857_vm0, %v2765_v6  ;;  %1903 = vmatpush.msrb.mxu3 %v2749_v3 }
  0x59   : > { %1622 = vst.msk [vmem:[%s2730_s20 + $0x40] sm:$0xff] %vm857_vm0, %v2771_v7 }
  0x5a   : > { %822 = vmatpush.msra.mxu0 %v2754_v4  ;;  %1904 = vmatpush.msrb.mxu3 %v2754_v4 }
  0x5c   : > { %823 = vmatpush.msra.mxu0 %v2760_v5  ;;  %1905 = vmatpush.msrb.mxu3 %v2760_v5 }
  0x5e   : > { %824 = vmatpush.msra.mxu0 %v2765_v6  ;;  %1906 = vmatpush.msrb.mxu3 %v2765_v6 }
  0x60   : > { %825 = vmatpush.msra.mxu0 %v2771_v7  ;;  %1907 = vmatpush.msrb.mxu3 %v2771_v7 }
  0x61   : > { %1835 = vmatmul.msk.f32.vlgmr.msra.gmra.mxu0 %vm785_vm1, %v777_v8  ;;  %v1077_v8 = vld [vmem:[#allocation8 + $0x8] sm:$0xff] }
  0x69   : > { %1836 = vmatmul.msk.f32.gmra.mxu0 %vm785_vm1, %v778_v9 }
  0x71   : > { %1837 = vmatmul.msk.f32.gmra.mxu0 %vm785_vm1, %v779_v10  ;;  %v1076_v10 = vld [vmem:[#allocation8] sm:$0xff] }
  0x79   : > { %1838 = vmatmul.msk.f32.gmra.mxu0 %vm785_vm1, %v780_v11 }
  0x81   : > { %1839 = vmatmul.msk.f32.gmra.mxu0 %vm785_vm1, %v781_v12 }
  0x89   : > { %1840 = vmatmul.msk.f32.gmra.mxu0 %vm785_vm1, %v782_v13 }
  0x91   : > { %1841 = vmatmul.msk.f32.gmra.mxu0 %vm785_vm1, %v783_v14 }
  0x99   : > { %1842 = vmatmul.msk.f32.gmra.mxu0 %vm785_vm1, %v784_v15 }
  0xde   : > { %v827_v17 = vpop.f32.mrf.mxu0 }
  0xe6   : > { %v830_v19 = vpop.f32.mrf.mxu0 }
  0xee   : > { %v833_v20 = vpop.f32.mrf.mxu0 }
  0xf6   : > { %v836_v21 = vpop.f32.mrf.mxu0 }
  0xfe   : > { %v839_v22 = vpop.f32.mrf.mxu0 }
  0xff   : > { %v851_v23 = vmax.f32 %v827_v17, %v839_v22 }
 0x101   : > { %1843 = vmatmul.msk.f32.vlgmr.msra.gmra.mxu1 %vm857_vm0, %v851_v23 }
 0x106   : > { %v842_v24 = vpop.f32.mrf.mxu0 }
 0x107   : > { %v852_v25 = vmax.f32 %v830_v19, %v842_v24 }
 0x109   : > { %1844 = vmatmul.msk.f32.gmra.mxu1 %vm857_vm0, %v852_v25 }
 0x10e   : > { %v845_v26 = vpop.f32.mrf.mxu0 }
 0x10f   : > { %v853_v27 = vmax.f32 %v833_v20, %v845_v26 }
 0x111   : > { %1845 = vmatmul.msk.f32.gmra.mxu1 %vm857_vm0, %v853_v27 }
 0x116   : > { %v848_v28 = vpop.f32.mrf.mxu0 }
 0x117   : > { %v854_v29 = vmax.f32 %v836_v21, %v848_v28 }
 0x119   : > { %1846 = vmatmul.msk.f32.gmra.mxu1 %vm857_vm0, %v854_v29 }
 0x17e   : > { %v887_v30 = vpop.f32.mrf.mxu1 }
 0x186   : > { %v890_v31 = vpop.f32.mrf.mxu1 }
 0x187   : > { %v2053_v35 = vpack.i.bf16 %v887_v30, %v890_v31 }
 0x18e   : > { %v893_v32 = vpop.f32.mrf.mxu1 }
 0x196   : > { %v896_v33 = vpop.f32.mrf.mxu1 }
 0x197   : > { %v2048_v34 = vpack.i.bf16 %v893_v32, %v896_v33 }
 0x199   : > { %2049 = vrot.lane.b32.xlu0 %v2048_v34, %s2478_s0 }
 0x1a1   : > { %2054 = vrot.lane.b32.xlu0 %v2053_v35, %s2478_s0 }
 0x20b   : > { %v2050_v36 = vpop.permute.xlu0 %2049 }
 0x20c   : > { %v2052_v37 = vunpack.i.h.bf16 %v2050_v36  ;;  %v2051_v38 = vunpack.i.l.bf16 %v2050_v36 }
 0x20e   : > { %v918_v39 = vmax.f32 %v896_v33, %v2051_v38  ;;  %v917_v40 = vmax.f32 %v893_v32, %v2052_v37 }
 0x210   : > { %940 = vmatpush.msra.mxu2 %v918_v39 }
 0x212   : > { %941 = vmatpush.msra.mxu2 %v917_v40 }
 0x213   : > { %v2055_v41 = vpop.permute.xlu0 %2054 }
 0x214   : > { %v2057_v42 = vunpack.i.h.bf16 %v2055_v41  ;;  %v2056_v43 = vunpack.i.l.bf16 %v2055_v41 }
 0x216   : > { %v916_v44 = vmax.f32 %v890_v31, %v2056_v43  ;;  %v915_v45 = vmax.f32 %v887_v30, %v2057_v42 }
 0x218   : > { %942 = vmatpush.msra.mxu2 %v916_v44 }
 0x21a   : > { %943 = vmatpush.msra.mxu2 %v915_v45 }
 0x21b   : > { %1847 = vmatmul.msk.f32.vlgmr.msra.gmra.mxu2 %vm921_vm2, %v919_v46 }
 0x21c   : > { %1025 = vmatpush.msrb.mxu2 %v2732_v0 }
 0x21e   : > { %1026 = vmatpush.msrb.mxu2 %v2734_v1 }
 0x220   : > { %1027 = vmatpush.msrb.mxu2 %v2743_v2 }
 0x222   : > { %1028 = vmatpush.msrb.mxu2 %v2749_v3 }
 0x223   : > { %1848 = vmatmul.msk.f32.gmra.mxu2 %vm921_vm2, %v920_v47  ;;  %v1140_v47 = vld [vmem:[#allocation10] sm:$0xff] }
 0x224   : > { %1029 = vmatpush.msrb.mxu2 %v2754_v4 }
 0x226   : > { %1030 = vmatpush.msrb.mxu2 %v2760_v5 }
 0x228   : > { %1031 = vmatpush.msrb.mxu2 %v2765_v6 }
 0x22a   : > { %1032 = vmatpush.msrb.mxu2 %v2771_v7 }
 0x22b   : > { %1851 = vmatmul.msk.f32.vlgmr.msrb.gmra.mxu2 %vm785_vm1, %v985_v50 }
 0x22c   : > { %1101 = vmatpush.msra.mxu2 %v1077_v8 }
 0x22e   : > { %1102 = vmatpush.msra.mxu2 %v1076_v10 }
 0x29e   : > { %v945_v49 = vpop.f32.mrf.mxu2 }
 0x29f   : > { %1849 = vmatmul.msk.f32.vlgmr.msra.gmra.mxu3 %vm953_vm3, %v945_v49  ;;  %v1212_v49 = vld [vmem:[%s2988_s10] sm:$0xff] }
 0x2a0   : > { %1476 = vmatpush.msra.mxu3 %v2732_v0 }
 0x2a2   : > { %1477 = vmatpush.msra.mxu3 %v2734_v1 }
 0x2a4   : > { %1478 = vmatpush.msra.mxu3 %v2743_v2 }
 0x2a6   : > { %v948_v51 = vpop.f32.mrf.mxu2  ;;  %1479 = vmatpush.msra.mxu3 %v2749_v3 }
 0x2a7   : > { %1850 = vmatmul.msk.f32.gmra.mxu3 %vm953_vm3, %v948_v51 }
 0x2a8   : > { %1480 = vmatpush.msra.mxu3 %v2754_v4 }
 0x2aa   : > { %1481 = vmatpush.msra.mxu3 %v2760_v5 }
 0x2ac   : > { %1482 = vmatpush.msra.mxu3 %v2765_v6 }
 0x2ae   : > { %1483 = vmatpush.msra.mxu3 %v2771_v7  ;;  %v1034_v16 = vpop.f32.mrf.mxu2 }
 0x2af   : > { %1852 = vmatmul.msk.f32.vlgmr.msrb.gmra.mxu3 %vm785_vm1, %v986_v52 }
 0x2b7   : > { %1853 = vmatmul.msk.f32.gmra.mxu3 %vm785_vm1, %v987_v53 }
 0x2bf   : > { %1854 = vmatmul.msk.f32.gmra.mxu3 %vm785_vm1, %v988_v54  ;;  %v1308_v54 = vld [vmem:[#allocation13 + $0x8] sm:$0xff] }
 0x2c7   : > { %1855 = vmatmul.msk.f32.gmra.mxu3 %vm785_vm1, %v989_v55 }
 0x2cf   : > { %1856 = vmatmul.msk.f32.gmra.mxu3 %vm785_vm1, %v990_v56  ;;  %v1307_v56 = vld [vmem:[#allocation13] sm:$0xff] }
 0x2d7   : > { %1857 = vmatmul.msk.f32.gmra.mxu3 %vm785_vm1, %v991_v57 }
 0x2df   : > { %1858 = vmatmul.msk.f32.gmra.mxu3 %vm785_vm1, %v992_v58 }
 0x322   : > { %v977_v60 = vpop.f32.mrf.mxu3 }
 0x323   : > { %v978_v61 = vadd.f32 %v977_v60, %v2876_v59 }
 0x325   : > { %983 = vst.msk [vmem:[%s2730_s20] sm:$0xff] %vm857_vm0, %v978_v61 }
 0x32a   : > { %v980_v62 = vpop.f32.mrf.mxu3 }
 0x32b   : > { %v981_v63 = vadd.f32 %v980_v62, %v2876_v59 }
 0x32d   : > { %984 = vst.msk [vmem:[%s2730_s20 + $0x8] sm:$0xff] %vm857_vm0, %v981_v63 }
 0x332   : > { %v1037_v9 = vpop.f32.mrf.mxu3 }
 0x33a   : > { %v1040_v11 = vpop.f32.mrf.mxu3 }
 0x33b   : > { %v1062_v15 = vrot.slane %v1040_v11, 4 }
 0x342   : > { %v1043_v12 = vpop.f32.mrf.mxu3 }
 0x343   : > { %v1063_v13 = vrot.slane %v1043_v12, 4 }
 0x345   : > { %v1064_v17 = vsel %vm1061_vm4, %v1062_v15, %v1063_v13 }
 0x346   : > { %v1070_v18 = vmax.f32 %v1034_v16, %v1064_v17 }
 0x34a   : > { %v1046_v14 = vpop.f32.mrf.mxu3 }
 0x34b   : > { %v1065_v19 = vrot.slane %v1046_v14, 4 }
 0x34d   : > { %v1066_v22 = vsel %vm1061_vm4, %v1063_v13, %v1065_v19  ;;  %v1072_v26 = vmax.f32 %v1040_v11, %v1065_v19 }
 0x34e   : > { %v1071_v23 = vmax.f32 %v1037_v9, %v1066_v22  ;;  %v1445_v22 = vld [vmem:[#allocation17 + $0x8] sm:$0xff] }
 0x352   : > { %v1049_v20 = vpop.f32.mrf.mxu3 }
 0x353   : > { %v1073_v21 = vmax.f32 %v1070_v18, %v1049_v20 }
 0x355   : > { %1859 = vmatmul.msk.f32.vlgmr.msra.gmra.mxu2 %vm857_vm0, %v1073_v21  ;;  %v1444_v21 = vld [vmem:[#allocation17] sm:$0xff] }
 0x356   : > { %1884 = vmatmul.msk.f32.vlgmr.msra.gmra.mxu3 %vm785_vm1, %v1444_v21  ;;  %v1555_v21 = vld [vmem:[%s2994_s16 + $0x8] sm:$0xff] }
 0x35a   : > { %v1052_v24 = vpop.f32.mrf.mxu3 }
 0x35b   : > { %v1074_v25 = vmax.f32 %v1071_v23, %v1052_v24  ;;  %v1446_v23 = vld [vmem:[#allocation17 + $0x10] sm:$0xff] }
 0x35d   : > { %1860 = vmatmul.msk.f32.gmra.mxu2 %vm857_vm0, %v1074_v25 }
 0x35e   : > { %1885 = vmatmul.msk.f32.gmra.mxu3 %vm785_vm1, %v1445_v22 }
 0x362   : > { %v1055_v27 = vpop.f32.mrf.mxu3 }
 0x363   : > { %v1075_v28 = vmax.f32 %v1072_v26, %v1055_v27  ;;  %v1447_v26 = vld [vmem:[#allocation17 + $0x18] sm:$0xff] }
 0x365   : > { %1861 = vmatmul.msk.f32.gmra.mxu2 %vm857_vm0, %v1075_v28 }
 0x366   : > { %1886 = vmatmul.msk.f32.gmra.mxu3 %vm785_vm1, %v1446_v23 }
 0x36e   : > { %1887 = vmatmul.msk.f32.gmra.mxu3 %vm785_vm1, %v1447_v26 }
 0x3d8   : > { %v1104_v29 = vpop.f32.mrf.mxu2 }
 0x3e0   : > { %v1107_v30 = vpop.f32.mrf.mxu2 }
 0x3e1   : > { %v2063_v32 = vpack.i.bf16 %v1104_v29, %v1107_v30 }
 0x3e8   : > { %v1110_v31 = vpop.f32.mrf.mxu2 }
 0x3e9   : > { %1132 = vrot.lane.b32.xlu2 %v1110_v31, %s2479_s1  ;;  %1120 = vrot.lane.b32.xlu1 %v1110_v31, %s2480_s19 }
 0x3f1   : > { %2064 = vrot.lane.b32.xlu2 %v2063_v32, %s2479_s1  ;;  %2059 = vrot.lane.b32.xlu1 %v2063_v32, %s2480_s19 }
 0x443   : > { %v1133_v33 = vpop.permute.xlu2 %1132 }
 0x44b   : > { %v2065_v37 = vpop.permute.xlu2 %2064 }
 0x44c   : > { %v2066_v41 = vunpack.i.l.bf16 %v2065_v37  ;;  %v2067_v44 = vunpack.i.h.bf16 %v2065_v37 }
 0x45b   : > { %v1121_v34 = vpop.permute.xlu1 %1120 }
 0x45c   : > { %v1127_v35 = vmax.f32 %v1110_v31, %v1121_v34 }
 0x45e   : > { %v1139_v36 = vmax.f32 %v1127_v35, %v1133_v33  ;;  %v1485_v33 = vpop.f32.mrf.mxu3 }
 0x460   : > { %1862 = vmatpush.msk.msrb.mxu1 %vm1061_vm4, %v1139_v36 }
 0x463   : > { %v2060_v38 = vpop.permute.xlu1 %2059 }
 0x464   : > { %v2062_v39 = vunpack.i.h.bf16 %v2060_v38  ;;  %v2061_v40 = vunpack.i.l.bf16 %v2060_v38 }
 0x466   : > { %v1126_v42 = vmax.f32 %v1107_v30, %v2061_v40  ;;  %v1125_v43 = vmax.f32 %v1104_v29, %v2062_v39  ;;  %v1448_v29 = vld [vmem:[#allocation17 + $0x20] sm:$0xff]  ;;  %v1449_v30 = vld [vmem:[#allocation17 + $0x28] sm:$0xff]  ;;  %v1488_v34 = vpop.f32.mrf.mxu3 }
 0x467   : > { %1888 = vmatmul.msk.f32.gmra.mxu3 %vm785_vm1, %v1448_v29 }
 0x468   : > { %v1138_v45 = vmax.f32 %v1126_v42, %v2066_v41  ;;  %v1137_v46 = vmax.f32 %v1125_v43, %v2067_v44 }
 0x46a   : > { %1166 = vmatpush.msrb.mxu1 %v1138_v45 }
 0x46c   : > { %1167 = vmatpush.msrb.mxu1 %v1137_v46 }
 0x46d   : > { %1863 = vmatmul.msk.f32.vlgmr.msrb.gmra.mxu1 %vm1142_vm5, %v1140_v47 }
 0x46e   : > { %1252 = vmatpush.msra.mxu1 %v2732_v0  ;;  %v1213_v0 = vld [vmem:[%s2988_s10 + $0x8] sm:$0xff]  ;;  %v1491_v37 = vpop.f32.mrf.mxu3 }
 0x46f   : > { %1889 = vmatmul.msk.f32.gmra.mxu3 %vm785_vm1, %v1449_v30 }
 0x470   : > { %1253 = vmatpush.msra.mxu1 %v2734_v1  ;;  %v1214_v1 = vld [vmem:[%s2988_s10 + $0x10] sm:$0xff] }
 0x472   : > { %1254 = vmatpush.msra.mxu1 %v2743_v2  ;;  %v1215_v2 = vld [vmem:[%s2988_s10 + $0x18] sm:$0xff] }
 0x474   : > { %1255 = vmatpush.msra.mxu1 %v2749_v3  ;;  %v1216_v3 = vld [vmem:[%s2988_s10 + $0x20] sm:$0xff] }
 0x475   : > { %1864 = vmatmul.msk.f32.gmra.mxu1 %vm1142_vm5, %v1141_v48 }
 0x476   : > { %1256 = vmatpush.msra.mxu1 %v2754_v4  ;;  %v1217_v4 = vld [vmem:[%s2988_s10 + $0x28] sm:$0xff]  ;;  %v1494_v45 = vpop.f32.mrf.mxu3 }
 0x478   : > { %1257 = vmatpush.msra.mxu1 %v2760_v5  ;;  %v1218_v5 = vld [vmem:[%s2988_s10 + $0x30] sm:$0xff] }
 0x47a   : > { %1258 = vmatpush.msra.mxu1 %v2765_v6  ;;  %v1219_v6 = vld [vmem:[%s2988_s10 + $0x38] sm:$0xf] }
 0x47c   : > { %1259 = vmatpush.msra.mxu1 %v2771_v7  ;;  %v1175_v7 = vld [vmem:[#allocation11] sm:$0x1f] }
 0x47d   : > { %1868 = vmatmul.msk.f32.vlgmr.msra.gmra.mxu1 %vm785_vm1, %v1212_v49  ;;  %1865 = vmatpush.msk.msrb.mxu2 %vm1183_vm6, %v1175_v7 }
 0x47f   : > { %1329 = vmatpush.msra.mxu2 %v1308_v54 }
 0x481   : > { %1330 = vmatpush.msra.mxu2 %v1307_v56  ;;  %v1407_v56 = vld [vmem:[#allocation16] sm:$0x7] }
 0x485   : > { %1869 = vmatmul.msk.f32.gmra.mxu1 %vm785_vm1, %v1213_v0 }
 0x48d   : > { %1870 = vmatmul.msk.f32.gmra.mxu1 %vm785_vm1, %v1214_v1 }
 0x495   : > { %1871 = vmatmul.msk.f32.gmra.mxu1 %vm785_vm1, %v1215_v2 }
 0x49d   : > { %1872 = vmatmul.msk.f32.gmra.mxu1 %vm785_vm1, %v1216_v3  ;;  %v1372_v3 = vld [vmem:[#allocation14] sm:$0xff] }
 0x4a5   : > { %1873 = vmatmul.msk.f32.gmra.mxu1 %vm785_vm1, %v1217_v4  ;;  %v1503_v4 = vmax.f32 %v1485_v33, %v1488_v34 }
 0x4ad   : > { %1874 = vmatmul.msk.f32.gmra.mxu1 %vm785_vm1, %v1218_v5  ;;  %v1509_v5 = vld [vmem:[#allocation19 + $0x8] sm:$0xff] }
 0x4b5   : > { %1875 = vmatmul.msk.f32.gmra.mxu1 %vm785_vm1, %v1219_v6  ;;  %v1508_v6 = vld [vmem:[#allocation19] sm:$0xff] }
 0x4ea   : > { %v1169_v50 = vpop.f32.mrf.mxu1  ;;  %v1497_v7 = vpop.f32.mrf.mxu3 }
 0x4eb   : > { %1866 = vmatmul.msk.f32.vlgmr.msrb.gmra.mxu2 %vm1176_vm7, %v1169_v50  ;;  %v1504_v50 = vmax.f32 %v1503_v4, %v1491_v37 }
 0x4ec   : > { %1881 = vmatpush.msk.msrb.mxu2 %vm1415_vm9, %v1407_v56 }
 0x4f2   : > { %v1172_v51 = vpop.f32.mrf.mxu1  ;;  %v1500_v54 = vpop.f32.mrf.mxu3 }
 0x4f3   : > { %1867 = vmatmul.msk.f32.gmra.mxu2 %vm1176_vm7, %v1172_v51  ;;  %v1373_v51 = vld [vmem:[#allocation14 + $0x8] sm:$0xff] }
 0x4fa   : > { %v1261_v52 = vpop.f32.mrf.mxu1 }
 0x502   : > { %v1264_v53 = vpop.f32.mrf.mxu1 }
 0x503   : > { %v1287_v61 = vrot.slane %v1264_v53, 4 }
 0x50a   : > { %v1267_v55 = vpop.f32.mrf.mxu1 }
 0x50b   : > { %v1288_v60 = vrot.slane %v1267_v55, 4 }
 0x50d   : > { %v1289_v62 = vsel %vm1061_vm4, %v1287_v61, %v1288_v60  ;;  %v1293_v16 = vmax.f32 %v1264_v53, %v1288_v60  ;;  %v1585_v61 = vld [vmem:[#allocation20] sm:$0x3] }
 0x50e   : > { %v1292_v10 = vmax.f32 %v1261_v52, %v1289_v62  ;;  %v1505_v52 = vmax.f32 %v1504_v50, %v1494_v45 }
 0x510   : > { %v1506_v53 = vmax.f32 %v1505_v52, %v1497_v7 }
 0x512   : > { %v1270_v57 = vpop.f32.mrf.mxu1  ;;  %v1507_v55 = vmax.f32 %v1506_v53, %v1500_v54 }
 0x513   : > { %v1294_v12 = vmax.f32 %v1292_v10, %v1270_v57 }
 0x51a   : > { %v1273_v58 = vpop.f32.mrf.mxu1 }
 0x51b   : > { %v1298_v9 = vrot.slane %v1273_v58, 4  ;;  %v1295_v17 = vmax.f32 %v1293_v16, %v1273_v58 }
 0x522   : > { %v1276_v63 = vpop.f32.mrf.mxu1 }
 0x523   : > { %v1299_v8 = vrot.slane %v1276_v63, 4 }
 0x525   : > { %v1300_v11 = vsel %vm1061_vm4, %v1298_v9, %v1299_v8  ;;  %v1304_v18 = vmax.f32 %v1295_v17, %v1299_v8 }
 0x526   : > { %v1303_v13 = vmax.f32 %v1294_v12, %v1300_v11 }
 0x52a   : > { %v1279_v14 = vpop.f32.mrf.mxu1 }
 0x52b   : > { %v1305_v15 = vmax.f32 %v1303_v13, %v1279_v14 }
 0x52d   : > { %1876 = vmatmul.msk.f32.vlgmr.msra.gmra.mxu2 %vm857_vm0, %v1305_v15 }
 0x532   : > { %v1282_v19 = vpop.f32.mrf.mxu1 }
 0x533   : > { %v1306_v20 = vmax.f32 %v1304_v18, %v1282_v19  ;;  %v1554_v19 = vld [vmem:[%s2994_s16] sm:$0xff] }
 0x535   : > { %1877 = vmatmul.msk.f32.gmra.mxu2 %vm857_vm0, %v1306_v20 }
 0x56e   : > { %v1204_v24 = vpop.f32.mrf.mxu2 }
 0x56f   : > { %v1205_v25 = vadd.f32 %v1204_v24, %v2876_v59 }
 0x571   : > { %1210 = vst.msk [vmem:[%s2730_s20 + $0x10] sm:$0xff] %vm857_vm0, %v1205_v25 }
 0x576   : > { %v1207_v27 = vpop.f32.mrf.mxu2 }
 0x577   : > { %v1208_v28 = vadd.f32 %v1207_v27, %v2876_v59 }
 0x579   : > { %1211 = vst.msk [vmem:[%s2730_s20 + $0x18] sm:$0xff] %vm857_vm0, %v1208_v28 }
 0x5b0   : > { %v1332_v31 = vpop.f32.mrf.mxu2 }
 0x5b1   : > { %1348 = vrot.lane.b32.xlu0 %v1332_v31, %s2481_s30  ;;  %1340 = vrot.lane.b32.xlu1 %v1332_v31, %s2482_s21 }
 0x5b8   : > { %v1335_v32 = vpop.f32.mrf.mxu2 }
 0x5b9   : > { %1358 = vrot.lane.b32.xlu1 %v1335_v32, %s2483_s26  ;;  %1350 = vrot.lane.b32.xlu2 %v1335_v32, %s2481_s30 }
 0x5ba   : > { %1342 = vrot.lane.b32.xlu0 %v1335_v32, %s2482_s21 }
 0x5c1   : > { %1364 = vrot.lane.b32.xlu1 %v1332_v31, %s2484_s22  ;;  %1356 = vrot.lane.b32.xlu2 %v1332_v31, %s2483_s26 }
 0x5c2   : > { %1366 = vrot.lane.b32.xlu0 %v1335_v32, %s2484_s22 }
 0x613   : > { %v1351_v38 = vpop.permute.xlu2 %1350 }
 0x61b   : > { %v1357_v46 = vpop.permute.xlu2 %1356 }
 0x623   : > { %v1349_v35 = vpop.permute.xlu0 %1348  ;;  %v1341_v36 = vpop.permute.xlu1 %1340 }
 0x624   : > { %v1346_v41 = vmax.f32 %v1332_v31, %v1341_v36 }
 0x626   : > { %v1354_v44 = vmax.f32 %v1346_v41, %v1349_v35 }
 0x628   : > { %v1362_v0 = vmax.f32 %v1354_v44, %v1357_v46 }
 0x62b   : > { %v1359_v39 = vpop.permute.xlu1 %1358 }
 0x62c   : > { %v1343_v40 = vpop.permute.xlu0 %1342 }
 0x62d   : > { %v1347_v42 = vmax.f32 %v1335_v32, %v1343_v40 }
 0x62f   : > { %v1355_v43 = vmax.f32 %v1347_v42, %v1351_v38 }
 0x631   : > { %v1363_v47 = vmax.f32 %v1355_v43, %v1359_v39 }
 0x633   : > { %v1365_v48 = vpop.permute.xlu1 %1364 }
 0x634   : > { %v1367_v49 = vpop.permute.xlu0 %1366  ;;  %v1370_v2 = vmax.f32 %v1362_v0, %v1365_v48 }
 0x635   : > { %v1371_v1 = vmax.f32 %v1363_v47, %v1367_v49 }
 0x637   : > { %1878 = vmatpush.msk.msrb.mxu0 %vm1061_vm4, %v1371_v1 }
 0x639   : > { %1399 = vmatpush.msrb.mxu0 %v1370_v2 }
 0x63a   : > { %1879 = vmatmul.msk.f32.vlgmr.msrb.gmra.mxu0 %vm1374_vm8, %v1372_v3 }
 0x63b   : > { %1527 = vmatpush.msra.mxu0 %v1509_v5 }
 0x63d   : > { %1528 = vmatpush.msra.mxu0 %v1508_v6 }
 0x63f   : > { %1893 = vmatpush.msk.msrb.mxu0 %vm1593_vm11, %v1585_v61 }
 0x642   : > { %1880 = vmatmul.msk.f32.gmra.mxu0 %vm1374_vm8, %v1373_v51 }
 0x64a   : > { %1890 = vmatmul.msk.f32.vlgmr.msra.gmra.mxu0 %vm857_vm0, %v1507_v55 }
 0x6b7   : > { %v1401_v57 = vpop.f32.mrf.mxu0 }
 0x6b8   : > { %1882 = vmatmul.msk.f32.vlgmr.msrb.gmra.mxu2 %vm1408_vm10, %v1401_v57 }
 0x6bf   : > { %v1404_v58 = vpop.f32.mrf.mxu0 }
 0x6c0   : > { %1883 = vmatmul.msk.f32.gmra.mxu2 %vm1408_vm10, %v1404_v58 }
 0x6c7   : > { %v1530_v60 = vpop.f32.mrf.mxu0 }
 0x6c8   : > { %1538 = vrot.lane.b32.xlu0 %v1530_v60, %s2485_s2  ;;  %1534 = vrot.lane.b32.xlu2 %v1530_v60, %s2486_s27 }
 0x6c9   : > { %1542 = vrot.lane.b32.xlu1 %v1530_v60, %s2481_s30 }
 0x6d0   : > { %1550 = vrot.lane.b32.xlu0 %v1530_v60, %s2479_s1  ;;  %1546 = vrot.lane.b32.xlu2 %v1530_v60, %s2478_s0 }
 0x722   : > { %v1535_v62 = vpop.permute.xlu2 %1534 }
 0x723   : > { %v1537_v63 = vmax.f32 %v1530_v60, %v1535_v62 }
 0x72a   : > { %v1547_v14 = vpop.permute.xlu2 %1546 }
 0x73a   : > { %v1539_v8 = vpop.permute.xlu0 %1538 }
 0x73b   : > { %v1541_v9 = vmax.f32 %v1537_v63, %v1539_v8  ;;  %v1436_v10 = vpop.f32.mrf.mxu2  ;;  %v1543_v11 = vpop.permute.xlu1 %1542 }
 0x73c   : > { %v1437_v12 = vadd.f32 %v1436_v10, %v2876_v59 }
 0x73d   : > { %v1545_v13 = vmax.f32 %v1541_v9, %v1543_v11 }
 0x73e   : > { %1442 = vst.msk [vmem:[%s2730_s20 + $0x20] sm:$0xff] %vm857_vm0, %v1437_v12 }
 0x73f   : > { %v1549_v15 = vmax.f32 %v1545_v13, %v1547_v14 }
 0x742   : > { %v1551_v16 = vpop.permute.xlu0 %1550 }
 0x743   : > { %v1553_v17 = vmax.f32 %v1549_v15, %v1551_v16  ;;  %v1439_v18 = vpop.f32.mrf.mxu2 }
 0x744   : > { %v1440_v20 = vadd.f32 %v1439_v18, %v2876_v59 }
 0x745   : > { %1577 = vmatpush.msra.mxu2 %v1553_v17 }
 0x746   : > { %1443 = vst.msk [vmem:[%s2730_s20 + $0x28] sm:$0xff] %vm857_vm0, %v1440_v20  ;;  %1891 = vmatmul.msk.f32.vlgmr.msra.gmra.mxu2 %vm953_vm3, %v1554_v19 }
 0x74e   : > { %1892 = vmatmul.msk.f32.gmra.mxu2 %vm953_vm3, %v1555_v21 }
 0x7c9   : > { %v1579_v22 = vpop.f32.mrf.mxu2 }
 0x7ca   : > { %1894 = vmatmul.msk.f32.vlgmr.msrb.gmra.mxu0 %vm1586_vm12, %v1579_v22 }
 0x7d1   : > { %v1582_v23 = vpop.f32.mrf.mxu2 }
 0x7d2   : > { %1895 = vmatmul.msk.f32.gmra.mxu0 %vm1586_vm12, %v1582_v23 }
 0x847   : > { %v1614_v24 = vpop.f32.mrf.mxu0 }
 0x848   : > { %v1615_v25 = vadd.f32 %v1614_v24, %v2876_v59 }
 0x84a   : > { %1620 = vst.msk [vmem:[%s2730_s20 + $0x30] sm:$0xff] %vm857_vm0, %v1615_v25 }
 0x84f   : > { %v1617_v26 = vpop.f32.mrf.mxu0 }
 0x850   : > { %v1618_v27 = vadd.f32 %v1617_v26, %v2876_v59 }
 0x852   : > { %1621 = vst.msk [vmem:[%s2730_s20 + $0x38] sm:$0xff] %vm857_vm0, %v1618_v27 }
 0x853 PF: > { %s3014_s23 = sld [smem:[#allocation29_spill]] }
 0x859   : > { %s36_s30 = sadd.s32 1, %s3014_s23  }
 0x85a   : > { %p33_p7 = scmp.ge.s32.totalorder %s36_s30, 4  }
 0x85c   :  { %35 = sbr.rel (!%p33_p7) target bundleno = 21 (0x15), region = 171 }
 0x861   :  { %1651 = vsyncpa [#allocation4], 1 }
 0x862   :  { %1653 = vsyncpa [#allocation4 + $0x1], 1 }
 0x863   :  { %1654 = vsyncpa [#allocation6], 1 }
 0x864   :  { %1655 = vsyncpa [#allocation9], 1 }
 0x865   :  { %1656 = vsyncpa [#allocation12], 1 }
 0x866   :  { %1657 = vsyncpa [#allocation15], 1 }
 0x867   :  { %1658 = vsyncpa [#allocation18], 1 }
 0x868   :  { %1659 = vsyncpa [#allocation21], 1 }

</bundles_post_ra>
